<compile_context>
chip_gen: v5e
topology: v5e:2x2
jax: 0.10.0
libtpu: 0.0.40
codegen_flags: <defaults>
</compile_context>

<pallas_src>
import functools

import jax
import jax.numpy as jnp
from jax.experimental import pallas as pl
from jax.experimental.pallas import tpu as pltpu


_MAX_ROWS_SINGLE_STEP = 512   # up to this many batch rows -> one grid step, no padding
_TILE_ROWS_LARGE_BATCH = 256  # rows per grid step for very large batches


def _vmem_capacity_bytes():
    """Per-TensorCore VMEM capacity; conservative default if the query fails."""
    try:
        cap = getattr(pltpu.get_tpu_info(), "vmem_capacity_bytes", None)
        if cap:
            return int(cap)
    except Exception:
        pass
    return 64 * 1024 * 1024  # v7x physical VMEM per TC (smallest of the three gens)


def _pad_granularity(itemsize):
    if itemsize >= 4:
        return 8
    if itemsize == 2:
        return 16
    return 32


# ----------------------------------------------------------------------------- kernels


def _onehot_gather_kernel(labels_ref, table_ref, out_ref, *, vocab):
    """Table is VMEM-resident; gather a whole (TB, H) tile with a one-hot MXU matmul."""
    labels = labels_ref[...]                                        # (tb, 1) int32
    rows = labels.shape[0]
    class_ids = jax.lax.broadcasted_iota(jnp.int32, (rows, vocab), 1)
    onehot = (class_ids == labels).astype(table_ref.dtype)          # (tb, V)
    # HIGHEST precision keeps f32 tables (near-)bit-exact; bf16 tables are exact.
    out_ref[...] = jnp.dot(
        onehot,
        table_ref[...],
        preferred_element_type=jnp.float32,
        precision=jax.lax.Precision.HIGHEST,
    ).astype(out_ref.dtype)


def _dma_gather_kernel(labels_ref, table_hbm, out_ref, row_buf, sems, *, rows_per_step):
    """Large-vocab path: table stays in HBM; K row DMAs per step into VMEM scratch."""
    base = pl.program_id(0) * rows_per_step
    # Issue all K row fetches first so they are in flight together (hides HBM latency).
    for r in range(rows_per_step):
        row = labels_ref[base + r]                                  # scalar from SMEM
        pltpu.make_async_copy(
            table_hbm.at[pl.ds(row, 1), :],
            row_buf.at[pl.ds(r, 1), :],
            sems.at[r],
        ).start()
    for r in range(rows_per_step):
        pltpu.make_async_copy(
            table_hbm.at[pl.ds(0, 1), :],          # same shape; only sem/byte-count matter
            row_buf.at[pl.ds(r, 1), :],
            sems.at[r],
        ).wait()
    out_ref[...] = row_buf[...]                     # dense (K, H) writeback


# ----------------------------------------------------------------------------- wrapper


@functools.partial(jax.jit, static_argnames=("method",))
def _embedding_gather(labels, table, method="auto"):
    """labels: int32 [B]; table: [V, H] -> [B, H] gathered rows (Pallas kernels)."""
    b = labels.shape[0]
    v, h = table.shape
    itemsize = jnp.dtype(table.dtype).itemsize
    table_bytes = v * h * itemsize
    gathered_bytes = b * h * itemsize

    capacity = _vmem_capacity_bytes()
    budget = int(0.75 * capacity)

    # Rows per grid step of the resident path (single step for typical batches).
    tb = b if b <= _MAX_ROWS_SINGLE_STEP else _TILE_ROWS_LARGE_BATCH
    resident_vmem_need = (
        table_bytes                      # single-buffered resident table
        + 2 * tb * h * itemsize          # double-buffered output tile
        + 2 * tb * 4                     # labels tile
        + tb * v * 4                     # one-hot intermediate
        + (2 << 20)                      # slack for compiler scratch
    )

    if method == "auto":
        # Prefer the row-gather when the table is vastly larger than the rows we need.
        # TODO(synk): crossover could be tuned per chip generation (v5e's slower HBM
        # favours the row-gather earlier than v6e/v7x).
        prefer_dma = table_bytes > 16 * max(gathered_bytes, 128 * 1024)
        method = "dma" if (prefer_dma or resident_vmem_need > budget) else "resident"

    if method == "resident":
        if b <= _MAX_ROWS_SINGLE_STEP:
            b_pad = b                                   # full-array blocks, no padding
        else:
            b_pad = pl.cdiv(b, tb) * tb
        labels_p = labels
        if b_pad != b:
            labels_p = jnp.concatenate(
                [labels, jnp.zeros((b_pad - b,), dtype=labels.dtype)]
            )
        labels2d = labels_p.reshape(b_pad, 1)
        n_steps = b_pad // tb
        vmem_limit = int(min(capacity, max(resident_vmem_need + (8 << 20), 32 << 20)))

        out = pl.pallas_call(
            functools.partial(_onehot_gather_kernel, vocab=v),
            out_shape=jax.ShapeDtypeStruct((b_pad, h), table.dtype),
            grid_spec=pltpu.PrefetchScalarGridSpec(
                num_scalar_prefetch=0,
                grid=(n_steps,),
                in_specs=[
                    pl.BlockSpec((tb, 1), lambda i: (i, 0)),
                    # Constant index_map: one HBM->VMEM DMA reused across the grid;
                    # single-buffered since the block never changes.
                    pl.BlockSpec((v, h), lambda i: (0, 0),
                                 pipeline_mode=pl.Buffered(1)),
                ],
                out_specs=pl.BlockSpec((tb, h), lambda i: (i, 0)),
            ),
            compiler_params=pltpu.CompilerParams(
                # Only shard over v7x's 2 TCs when there are >= 2 steps; otherwise it
                # would just duplicate the full-table DMA.
                dimension_semantics=(("parallel",) if n_steps >= 2 else ("arbitrary",)),
                vmem_limit_bytes=vmem_limit,
            ),
            cost_estimate=pl.CostEstimate(
                flops=int(2 * b_pad * v * h),
                transcendentals=0,
                bytes_accessed=int(table_bytes + b_pad * 4 + b_pad * h * itemsize),
            ),
        )(labels2d, table)
        return out if b_pad == b else out[:b]

    # ---- "dma": large-vocab row gather, K rows per step via manual async copies. ----
    k_rows = _pad_granularity(itemsize)                 # 8 (f32) / 16 (bf16) / 32 (int8)
    b_pad = pl.cdiv(b, k_rows) * k_rows
    labels_p = labels
    if b_pad != b:
        labels_p = jnp.concatenate(
            [labels, jnp.zeros((b_pad - b,), dtype=labels.dtype)]   # row 0 is in-bounds
        )

    out = pl.pallas_call(
        functools.partial(_dma_gather_kernel, rows_per_step=k_rows),
        out_shape=jax.ShapeDtypeStruct((b_pad, h), table.dtype),
        grid_spec=pltpu.PrefetchScalarGridSpec(
            num_scalar_prefetch=1,                       # labels -> SMEM
            grid=(b_pad // k_rows,),
            in_specs=[pl.BlockSpec(memory_space=pl.ANY)],  # table stays in HBM
            out_specs=pl.BlockSpec((k_rows, h), lambda i, labels: (i, 0)),
            scratch_shapes=[
                pltpu.VMEM((k_rows, h), table.dtype),
                pltpu.SemaphoreType.DMA((k_rows,)),
            ],
        ),
        compiler_params=pltpu.CompilerParams(
            dimension_semantics=("arbitrary",),
        ),
        cost_estimate=pl.CostEstimate(
            flops=0,
            transcendentals=0,
            bytes_accessed=int(2 * b_pad * h * itemsize + b_pad * 4),
        ),
    )(labels_p, table)
    return out if b_pad == b else out[:b]


# ----------------------------------------------------------------------------- module


class LabelEmbedder:
    """JAX/Pallas port of the PyTorch LabelEmbedder (class embedding + CFG label drop)."""

    def __init__(self, num_classes, hidden_size, dropout_prob, *, param_key,
                 dtype=jnp.float32):
        use_cfg_embedding = int(dropout_prob > 0)
        # nn.Embedding default init: N(0, 1).
        self.embedding_table = jax.random.normal(
            param_key, (num_classes + use_cfg_embedding, hidden_size)
        ).astype(dtype)
        self.num_classes = num_classes
        self.hidden_size = hidden_size
        self.dropout_prob = dropout_prob

    def token_drop(self, labels, drop_key=None, force_drop_ids=None):
        if force_drop_ids is None:
            drop_ids = (
                jax.random.uniform(drop_key, (labels.shape[0],)) < self.dropout_prob
            )
        else:
            drop_ids = force_drop_ids == 1
        return jnp.where(drop_ids, self.num_classes, labels)

    def __call__(self, labels, train, drop_key=None, force_drop_ids=None):
        labels = labels.astype(jnp.int32)
        use_dropout = self.dropout_prob > 0
        if (train and use_dropout) or (force_drop_ids is not None):
            if force_drop_ids is not None and not use_dropout:
                # Without a CFG row, index `num_classes` would be an OOB gather.
                raise ValueError(
                    "force_drop_ids requires dropout_prob > 0 "
                    "(no CFG embedding row was allocated)."
                )
            labels = self.token_drop(labels, drop_key, force_drop_ids)
        emb = _embedding_gather(labels, self.embedding_table)
        # .unsqueeze(1) in the PyTorch reference.
        return emb[:, None, :]


if __name__ == "__main__":
    key = jax.random.PRNGKey(0)
    k_param, k_labels, k_drop = jax.random.split(key, 3)

    num_classes = 10
    hidden_size = 128
    dropout_prob = 0.1
    batch = 10  # deliberately not a multiple of 8

    embedder = LabelEmbedder(num_classes, hidden_size, dropout_prob, param_key=k_param)
    labels = jax.random.randint(k_labels, (batch,), 0, num_classes, dtype=jnp.int32)

    # Eval-mode forward (no token drop) — deterministic, resident one-hot MXU path.
    out_eval = jax.block_until_ready(embedder(labels, train=False))

    # Train-mode forward with random CFG label dropout.
    out_train = jax.block_until_ready(embedder(labels, train=True, drop_key=k_drop))

    # Deterministic forced-drop path.
    force_drop = (jnp.arange(batch) % 2).astype(jnp.int32)
    out_forced = jax.block_until_ready(
        embedder(labels, train=False, force_drop_ids=force_drop)
    )

    # Explicitly exercise the large-vocab manual-DMA gather path at small shapes too.
    out_dma = jax.block_until_ready(
        _embedding_gather(labels, embedder.embedding_table, method="dma")
    )

    # Reference checks (plain JAX gather).
    ref_eval = embedder.embedding_table[labels][:, None, :]
    dropped = jnp.where(force_drop == 1, num_classes, labels)
    ref_forced = embedder.embedding_table[dropped][:, None, :]

    assert out_eval.shape == (batch, 1, hidden_size)
    assert out_train.shape == (batch, 1, hidden_size)
    assert out_forced.shape == (batch, 1, hidden_size)
    assert jnp.allclose(out_eval, ref_eval), "resident-path gather mismatch vs reference"
    assert jnp.allclose(out_forced, ref_forced), "forced-drop gather mismatch vs reference"
    assert jnp.allclose(out_dma, ref_eval[:, 0, :]), "manual-DMA gather mismatch vs reference"

    print("KERNEL_OK")
</pallas_src>

<mosaic_0001>
module attributes {stable_mosaic.version = 11 : i64} {
  func.func @_onehot_gather_kernel(%arg0: i32, %arg1: memref<10x1xi32, #tpu.memory_space<vmem>>, %arg2: memref<11x128xf32, #tpu.memory_space<vmem>>, %arg3: memref<10x128xf32, #tpu.memory_space<vmem>>) attributes {dimension_semantics = [#tpu.dimension_semantics<arbitrary>], iteration_bounds = array<i64: 1>, scalar_prefetch = 0 : i64, scratch_operands = 0 : i64, tpu.core_type = #tpu.core_type<tc>, window_params = [{transform_indices = @transform_0, window_bounds = array<i64: 10, 1>}, {pipeline_mode = #tpu.pipeline_mode<synchronous>, transform_indices = @transform_1, window_bounds = array<i64: 11, 128>}, {transform_indices = @transform_2, window_bounds = array<i64: 10, 128>}]} {
    %c0 = arith.constant 0 : index
    %c0_0 = arith.constant 0 : index
    %0 = vector.load %arg1[%c0, %c0_0] : memref<10x1xi32, #tpu.memory_space<vmem>>, vector<10x1xi32>
    %1 = tpu.iota {dimensions = array<i32: 1>} : vector<10x11xi32>
    %2 = vector.broadcast %0 : vector<10x1xi32> to vector<10x11xi32>
    %3 = arith.cmpi eq, %1, %2 : vector<10x11xi32>
    %4 = arith.extui %3 : vector<10x11xi1> to vector<10x11xi32>
    %5 = arith.sitofp %4 : vector<10x11xi32> to vector<10x11xf32>
    %c0_1 = arith.constant 0 : index
    %c0_2 = arith.constant 0 : index
    %6 = vector.load %arg2[%c0_1, %c0_2] : memref<11x128xf32, #tpu.memory_space<vmem>>, vector<11x128xf32>
    %cst = arith.constant dense<0.000000e+00> : vector<10x128xf32>
    %7 = tpu.matmul %5, %6, %cst {dimension_numbers = #tpu.dot_dimension_numbers<[1], [0], [0], [1], [0, 0, 1, 1], [], []>, precision = #tpu.contract_precision<fp32>} : vector<10x11xf32>, vector<11x128xf32>, vector<10x128xf32> -> vector<10x128xf32>
    %c0_3 = arith.constant 0 : index
    %c0_4 = arith.constant 0 : index
    %8 = vector.load %arg3[%c0_3, %c0_4] : memref<10x128xf32, #tpu.memory_space<vmem>>, vector<10x128xf32>
    tpu.vector_store %arg3[%c0_3, %c0_4], %7 {strides = array<i32>} : memref<10x128xf32, #tpu.memory_space<vmem>>, vector<10x128xf32>,
    return
  }
  func.func @transform_0(%arg0: i32) -> (i32, i32) {
    %c0_i32 = arith.constant 0 : i32
    %c0_i32_0 = arith.constant 0 : i32
    return %arg0, %c0_i32 : i32, i32
  }
  func.func @transform_1(%arg0: i32) -> (i32, i32) {
    %c0_i32 = arith.constant 0 : i32
    %c0_i32_0 = arith.constant 0 : i32
    %c0_i32_1 = arith.constant 0 : i32
    return %c0_i32, %c0_i32_0 : i32, i32
  }
  func.func @transform_2(%arg0: i32) -> (i32, i32) {
    %c0_i32 = arith.constant 0 : i32
    %c0_i32_0 = arith.constant 0 : i32
    return %arg0, %c0_i32 : i32, i32
  }
}

</mosaic_0001>

<bundles_post_ra>
// kernel: _embedding_gather.1
= control target key start
LH: loop header
LB: loop body
LE: loop exit
PB: predicated region body
PF: predicated region fallthrough
CT: control target
= control target key end

     0   :  { %v295_v2 = vmov 0   ;;  %vm37_vm0 = vcmask 1042432   ;;  %s338_s0 = inlined_call_operand.vmem [shape: s32[10,1], index: 0, kind: input, shape index: {}]   ;;  %s339_s1 = inlined_call_operand.vmem [shape: f32[11,128], index: 1, kind: input, shape index: {}]   ;;  %s340_s2 = inlined_call_operand.hbm [shape: f32[10,128], index: 2, kind: output, shape index: {}]  }
   0x1   :  { %v13_v0 = vld [vmem:[%s338_s0 + $0x8] sm:$0x3]  ;;  %268 = vset.pattern.permute.xlu0 %v295_v2 }
   0x2   :  { %v29_v1 = vld [vmem:[%s339_s1 + $0x8] sm:$0x7] }
   0x3   :  { %7 = vsyncpa [#allocation3], 0  ;;  %20 = vperm.xlu0 %268, %v13_v0   ;;  %v39_v3 = vsel %vm37_vm0, %v29_v1, 0  ;;  %v12_v6 = vld [vmem:[%s338_s0] sm:$0xff]  ;;  %v14_v16 = vlaneseq  ;;  %vm30_vm1 = vcmask 89088   ;;  %v296_v19 = vmov 0.0  }
   0x4   :  { %v55_v4 = vand.u32 4294901760, %v39_v3  ;;  %v28_v10 = vld [vmem:[%s339_s1] sm:$0xff]  ;;  %s297_s0 = smov [#allocation2]   ;;  %s239_s19 = sshll.u32 %s340_s2, 4  ;;  %s240_s19 = int_to_ptr.hbm [resolvable:$true] %s239_s19 }
   0x5   :  { %v57_v11 = vand.u32 4294901760, %v28_v10  ;;  %v15_v17 = vand.u32 127, %v14_v16  ;;  %s237_s1 = sshll.u32 %s297_s0, 4  ;;  %s298_s20 = smov 128   ;;  %s238_s1 = int_to_ptr.vmem [resolvable:$true] %s237_s1 }
   0x6   :  { %v91_v5 = vsub.f32 %v39_v3, %v55_v4  ;;  %259 = vmatpush.msra.mxu2 %v55_v4  ;;  %56 = vmatpush.msra.mxu0 %v55_v4  ;;  %s299_s21 = smov 8  }
   0x7   :  { %v97_v12 = vsub.f32 %v28_v10, %v57_v11 }
   0x8   :  { %v92_v7 = vand.u32 4294901760, %v91_v5  ;;  %260 = vmatpush.msra.mxu2 %v57_v11  ;;  %58 = vmatpush.msra.mxu0 %v57_v11 }
   0x9   :  { %v98_v13 = vand.u32 4294901760, %v97_v12 }
   0xa   :  { %v93_v8 = vsub.f32 %v91_v5, %v92_v7  ;;  %127 = vmatpush.msrb.mxu2 %v91_v5  ;;  %190 = vmatpush.msrb.mxu0 %v92_v7 }
   0xb   :  { %17 = vperm.xlu0 %268, %v12_v6   ;;  %v99_v14 = vsub.f32 %v97_v12, %v98_v13 }
   0xc   :  { %v94_v9 = vand.u32 4294901760, %v93_v8  ;;  %130 = vmatpush.msrb.mxu2 %v97_v12  ;;  %194 = vmatpush.msrb.mxu0 %v98_v13 }
   0xd   :  { %v100_v15 = vand.u32 4294901760, %v99_v14 }
   0xe   :  { %261 = vmatpush.msra.mxu3 %v94_v9  ;;  %95 = vmatpush.msra.mxu1 %v94_v9 }
  0x10   :  { %262 = vmatpush.msra.mxu3 %v100_v15  ;;  %101 = vmatpush.msra.mxu1 %v100_v15 }
  0x12   :  { %157 = vmatpush.msrb.mxu3 %v55_v4  ;;  %219 = vmatpush.msrb.mxu1 %v55_v4 }
  0x14   :  { %159 = vmatpush.msrb.mxu3 %v57_v11  ;;  %221 = vmatpush.msrb.mxu1 %v57_v11 }
  0x75   :  { %v21_v18 = vpop.permute.xlu0 %20 }
  0x76   :  { %vm23_vm2 = vcmp.eq.s32.totalorder %v15_v17, %v21_v18 }
  0x77   :  { %v252_v20 = vsel %vm23_vm2, 1.0, %v296_v19 }
  0x78   :  { %v35_v21 = vsel %vm30_vm1, %v252_v20, 0  ;;  %254 = vmatmul.msk.f32.vlgmr.msra.gmra.mxu3 %vm30_vm1, %v252_v20 }
  0x79   :  { %v68_v22 = vsub.f32 %v35_v21, %v35_v21 }
  0x7b   :  { %v69_v23 = vand.u32 4294901760, %v68_v22 }
  0x7d   :  { %v18_v24 = vpop.permute.xlu0 %17  ;;  %v70_v25 = vsub.f32 %v68_v22, %v69_v23 }
  0x7e   :  { %vm22_vm3 = vcmp.eq.s32.totalorder %v15_v17, %v18_v24 }
  0x7f   :  { %v251_v26 = vsel %vm22_vm3, 1.0, %v296_v19  ;;  %v71_v27 = vand.u32 4294901760, %v70_v25 }
  0x80   :  { %v32_v28 = vsel %vm30_vm1, %v251_v26, 0  ;;  %253 = vmatmul.msk.f32.vlgmr.msra.gmra.mxu1 %vm30_vm1, %v251_v26 }
  0x81   :  { %v60_v29 = vsub.f32 %v32_v28, %v32_v28  ;;  %72 = vmatmul.f32.vlgmr.msra.gmra.mxu2 %v71_v27 }
  0x83   :  { %v61_v30 = vand.u32 4294901760, %v60_v29 }
  0x85   :  { %163 = vmatmul.f32.vlgmr.msrb.gmra.mxu3 %v61_v30  ;;  %v62_v31 = vsub.f32 %v60_v29, %v61_v30 }
  0x87   :  { %v63_v32 = vand.u32 4294901760, %v62_v31 }
  0x88   :  { %257 = vmatmul.msk.f32.vlgmr.msrb.gmra.mxu1 %vm30_vm1, %v251_v26 }
  0x89   :  { %64 = vmatmul.f32.vlgmr.msra.gmra.mxu0 %v63_v32  ;;  %133 = vmatmul.f32.vlgmr.msrb.gmra.mxu2 %v60_v29 }
  0x8d   :  { %169 = vmatmul.f32.gmra.mxu3 %v69_v23 }
  0x90   :  { %258 = vmatmul.msk.f32.gmra.mxu1 %vm30_vm1, %v252_v20 }
  0x91   :  { %138 = vmatmul.f32.gmra.mxu2 %v68_v22  ;;  %255 = vmatmul.msk.f32.vlgmr.msrb.gmra.mxu0 %vm30_vm1, %v251_v26 }
  0x99   :  { %256 = vmatmul.msk.f32.gmra.mxu0 %vm30_vm1, %v252_v20 }
  0xfb   :  { %v108_v33 = vpop.f32.mrf.mxu3 }
  0xfd   :  { %v104_v35 = vpop.f32.mrf.mxu1 }
 0x104   :  { %v73_v34 = vpop.f32.mrf.mxu2 }
 0x105   :  { %v224_v43 = vpop.f32.mrf.mxu1  ;;  %v109_v45 = vadd.f32 %v108_v33, %v73_v34 }
 0x106   :  { %v65_v36 = vpop.f32.mrf.mxu0 }
 0x107   :  { %v105_v37 = vadd.f32 %v104_v35, %v65_v36 }
 0x108   :  { %v164_v38 = vpop.f32.mrf.mxu3 }
 0x10c   :  { %v134_v39 = vpop.f32.mrf.mxu2 }
 0x10d   :  { %v135_v40 = vadd.f32 %v134_v39, %v105_v37  ;;  %v228_v53 = vpop.f32.mrf.mxu1 }
 0x10e   :  { %v197_v41 = vpop.f32.mrf.mxu0 }
 0x10f   :  { %v165_v42 = vadd.f32 %v164_v38, %v135_v40 }
 0x110   :  { %v170_v49 = vpop.f32.mrf.mxu3 }
 0x111   :  { %v198_v44 = vadd.f32 %v197_v41, %v165_v42 }
 0x113   :  { %v225_v46 = vadd.f32 %v224_v43, %v198_v44 }
 0x114   :  { %v139_v47 = vpop.f32.mrf.mxu2 }
 0x115   :  { %231 = vst [vmem:[#allocation2] sm:$0xff] %v225_v46  ;;  %v140_v48 = vadd.f32 %v139_v47, %v109_v45 }
 0x116   :  { %v201_v51 = vpop.f32.mrf.mxu0 }
 0x117   :  { %v171_v50 = vadd.f32 %v170_v49, %v140_v48 }
 0x119   :  { %v202_v52 = vadd.f32 %v201_v51, %v171_v50 }
 0x11b   :  { %v229_v54 = vadd.f32 %v228_v53, %v202_v52 }
 0x11d   :  { %232 = vst [vmem:[#allocation2 + $0x8] sm:$0x3] %v229_v54 }
 0x11e   :  { %245 = dma.vmem_to_hbm [thread:$0]  %s238_s1, 256, %s240_s19, [#allocation3], %s298_s20, %s298_s20, %s299_s21  }
 0x11f   :  { %293 = dma.done.wait [#allocation3], 256  }
 0x120   :  { %294 = vsyncadd [#allocation3], 4294967040 }
 0x121   :  { %250 = vsyncpa [#allocation3], 1 }

</bundles_post_ra>
